<compile_context>
chip_gen: v5e
topology: v5e:2x2
jax: 0.10.0
libtpu: 0.0.40
codegen_flags: <defaults>
</compile_context>

<pallas_src>
import jax
import jax.numpy as jnp
from jax.experimental import pallas as pl
from jax.experimental.pallas import tpu as pltpu

# ----------------------------- config ---------------------------------------
B = 2          # batch
S = 8          # sequence length
H = 32         # hid_dim
NH = 4         # n_heads
HD = H // NH   # head dim
PF = 64        # pf_dim
EPS = 1e-12    # LayerNorm variance_epsilon
SCALE = float(HD) ** 0.5
VEC_LANES = 128  # lane width of the packed bias/LayerNorm slab

# lane offsets inside the packed weight slab (each block starts on a 128-lane tile)
W_QKV_OFF = 0      # fused Q|K|V weights  [H, 3H]  (96 lanes)
W_FF1_OFF = 128    # FFN first linear     [H, PF]  (64 lanes)
W_OUT_OFF = 256    # attention out proj   [H, H]   (32 lanes)
W_LANES = 384


def _layernorm(x, gamma, beta):
    # Matches the PyTorch LayerNorm in the module:
    #   mean over last dim; torch.std default is UNBIASED (divide by H-1);
    #   out = gamma * (x - mean) / (std + eps) + beta
    mean = jnp.mean(x, axis=-1, keepdims=True)
    diff = x - mean
    var_unbiased = jnp.sum(diff * diff, axis=-1, keepdims=True) / (x.shape[-1] - 1)
    std = jnp.sqrt(var_unbiased)
    return gamma * (diff / (std + EPS)) + beta


def encoder_layer_kernel(x_ref, w_ref, w2_ref, vecs_ref, out_ref, attn_ref):
    x = x_ref[...]                                   # [B*S, H]

    # unpack the consolidated vector slab (static, lane-0-anchored slices)
    bqkv = vecs_ref[0:1, :3 * H]                     # [1, 3H]
    b1 = vecs_ref[1:2, :PF]                          # [1, PF]
    bo = vecs_ref[2:3, :H]
    b2 = vecs_ref[3:4, :H]
    g1 = vecs_ref[4:5, :H]
    be1 = vecs_ref[5:6, :H]
    g2 = vecs_ref[6:7, :H]
    be2 = vecs_ref[7:8, :H]

    # unpack the consolidated weight slab (all slices 128-lane aligned)
    wqkv = w_ref[:, W_QKV_OFF:W_QKV_OFF + 3 * H]     # [H, 3H]
    w1 = w_ref[:, W_FF1_OFF:W_FF1_OFF + PF]          # [H, PF]
    wo = w_ref[:, W_OUT_OFF:W_OUT_OFF + H]           # [H, H]

    # ---- fused Q|K|V projection (1/sqrt(HD) already folded into the Q part) ----
    qkv = jnp.dot(x, wqkv, preferred_element_type=jnp.float32) + bqkv   # [B*S, 3H]

    def split_heads(off):
        # [B*S, 3H] slab -> [B*NH, S, HD], batch-major over heads
        return jnp.stack(
            [qkv[b * S:(b + 1) * S, off + h * HD: off + (h + 1) * HD]
             for b in range(B) for h in range(NH)], axis=0)

    qh = split_heads(0)          # [B*NH, S, HD]
    kh = split_heads(H)
    vh = split_heads(2 * H)

    # ---- batched scaled dot-product attention (no explicit transpose) ----
    energy = jnp.einsum("bqd,bkd->bqk", qh, kh,
                        preferred_element_type=jnp.float32)      # [B*NH, S, S]
    m = jnp.max(energy, axis=-1, keepdims=True)
    e = jnp.exp(energy - m)
    p = e / jnp.sum(e, axis=-1, keepdims=True)                   # softmax
    attn_ref[...] = p                                            # single store

    ctx = jnp.einsum("bqk,bkd->bqd", p, vh,
                     preferred_element_type=jnp.float32)         # [B*NH, S, HD]
    # reassemble [B*S, H] (heads back on the lane axis)
    ctx2 = jnp.concatenate(
        [jnp.concatenate([ctx[b * NH + h] for h in range(NH)], axis=1)
         for b in range(B)], axis=0)                             # [B*S, H]

    sa = jnp.dot(ctx2, wo, preferred_element_type=jnp.float32) + bo

    # ---- residual + LayerNorm 1 (dropout = identity) ----
    t = _layernorm(x + sa, g1, be1)

    # ---- positionwise feedforward (Conv1d k=1 == per-position linear) ----
    hdn = jnp.maximum(
        jnp.dot(t, w1, preferred_element_type=jnp.float32) + b1, 0.0)    # [B*S, PF]
    ff = jnp.dot(hdn, w2_ref[...], preferred_element_type=jnp.float32) + b2

    # ---- residual + LayerNorm 2 ----
    out_ref[...] = _layernorm(t + ff, g2, be2)


def _pack_row(v):
    v = v.reshape(-1)
    return jnp.pad(v, (0, VEC_LANES - v.shape[0]))


def encoder_layer(x, params):
    (wq, bq, wk, bk, wv, bv, wo, bo, w1, b1, w2, b2, g1, be1, g2, be2) = params

    # Fold the attention scale into the Q projection (exact) and fuse Q|K|V.
    wqkv = jnp.concatenate([wq / SCALE, wk, wv], axis=1)          # [H, 3H]
    bqkv = jnp.concatenate([bq / SCALE, bk, bv], axis=1)          # [1, 3H]

    # Pack the three H-row weight matrices into one lane-tile-aligned slab.
    wslab = jnp.zeros((H, W_LANES), jnp.float32)
    wslab = wslab.at[:, W_QKV_OFF:W_QKV_OFF + 3 * H].set(wqkv)
    wslab = wslab.at[:, W_FF1_OFF:W_FF1_OFF + PF].set(w1)
    wslab = wslab.at[:, W_OUT_OFF:W_OUT_OFF + H].set(wo)

    # Pack all small per-feature vectors into one [8, 128] slab -> one DMA.
    vecs = jnp.stack([_pack_row(v) for v in
                      (bqkv, b1, bo, b2, g1, be1, g2, be2)])      # [8, 128]

    vmem = pl.BlockSpec(memory_space=pltpu.MemorySpace.VMEM)
    out2d, attn3d = pl.pallas_call(
        encoder_layer_kernel,
        in_specs=[vmem] * 4,
        out_specs=(vmem, vmem),
        out_shape=(jax.ShapeDtypeStruct((B * S, H), jnp.float32),
                   jax.ShapeDtypeStruct((B * NH, S, S), jnp.float32)),
    )(x.reshape(B * S, H), wslab, w2, vecs)

    return out2d.reshape(B, S, H), attn3d.reshape(B, NH, S, S)


def init_params(key):
    ks = jax.random.split(key, 12)
    def lin(k, out_dim, in_dim):
        # PyTorch Linear weight is [out, in]; pre-transpose to [in, out] for x @ W.
        w = (jax.random.normal(k, (out_dim, in_dim), jnp.float32) * 0.05).T
        return w
    wq = lin(ks[0], H, H); bq = jax.random.normal(ks[1], (1, H), jnp.float32) * 0.01
    wk = lin(ks[2], H, H); bk = jax.random.normal(ks[3], (1, H), jnp.float32) * 0.01
    wv = lin(ks[4], H, H); bv = jax.random.normal(ks[5], (1, H), jnp.float32) * 0.01
    wo = lin(ks[6], H, H); bo = jax.random.normal(ks[7], (1, H), jnp.float32) * 0.01
    # Conv1d(hid, pf, 1) weight [pf, hid, 1] -> [hid, pf] matmul operand
    w1 = lin(ks[8], PF, H); b1 = jax.random.normal(ks[9], (1, PF), jnp.float32) * 0.01
    w2 = lin(ks[10], H, PF); b2 = jax.random.normal(ks[11], (1, H), jnp.float32) * 0.01
    g1 = jnp.ones((1, H), jnp.float32); be1 = jnp.zeros((1, H), jnp.float32)
    g2 = jnp.ones((1, H), jnp.float32); be2 = jnp.zeros((1, H), jnp.float32)
    return (wq, bq, wk, bk, wv, bv, wo, bo, w1, b1, w2, b2, g1, be1, g2, be2)


def reference(x, params):
    (wq, bq, wk, bk, wv, bv, wo, bo, w1, b1, w2, b2, g1, be1, g2, be2) = params
    def ln(t, g, be):
        mean = jnp.mean(t, -1, keepdims=True)
        d = t - mean
        std = jnp.sqrt(jnp.sum(d * d, -1, keepdims=True) / (H - 1))
        return g * (d / (std + EPS)) + be
    q = x @ wq + bq; k = x @ wk + bk; v = x @ wv + bv
    qh = q.reshape(B, S, NH, HD).transpose(0, 2, 1, 3)
    kh = k.reshape(B, S, NH, HD).transpose(0, 2, 1, 3)
    vh = v.reshape(B, S, NH, HD).transpose(0, 2, 1, 3)
    energy = jnp.einsum("bhqd,bhkd->bhqk", qh, kh) / SCALE
    attn = jax.nn.softmax(energy, axis=-1)
    ctx = jnp.einsum("bhqk,bhkd->bhqd", attn, vh).transpose(0, 2, 1, 3).reshape(B, S, H)
    sa = ctx @ wo + bo
    t = ln(x + sa, g1, be1)
    ff = jnp.maximum(t @ w1 + b1, 0.0) @ w2 + b2
    return ln(t + ff, g2, be2), attn


if __name__ == "__main__":
    key = jax.random.PRNGKey(0)
    kx, kp = jax.random.split(key)
    x = jax.random.normal(kx, (B, S, H), jnp.float32)
    params = init_params(kp)

    out, attn = encoder_layer(x, params)
    out = jax.block_until_ready(out)
    attn = jax.block_until_ready(attn)

    ref_out, ref_attn = reference(x, params)
    assert jnp.allclose(out, ref_out, atol=1e-4, rtol=1e-4)
    assert jnp.allclose(attn, ref_attn, atol=1e-5, rtol=1e-5)
    print("KERNEL_OK")
</pallas_src>

<mosaic_0001>
module attributes {stable_mosaic.version = 11 : i64} {
  func.func @encoder_layer_kernel(%arg0: memref<16x32xf32, #tpu.memory_space<vmem>>, %arg1: memref<32x384xf32, #tpu.memory_space<vmem>>, %arg2: memref<64x32xf32, #tpu.memory_space<vmem>>, %arg3: memref<8x128xf32, #tpu.memory_space<vmem>>, %arg4: memref<16x32xf32, #tpu.memory_space<vmem>>, %arg5: memref<8x8x8xf32, #tpu.memory_space<vmem>>) attributes {dimension_semantics = [], scalar_prefetch = 0 : i64, scratch_operands = 0 : i64, tpu.core_type = #tpu.core_type<tc>} {
    %c0 = arith.constant 0 : index
    %c0_0 = arith.constant 0 : index
    %0 = vector.load %arg0[%c0, %c0_0] : memref<16x32xf32, #tpu.memory_space<vmem>>, vector<16x32xf32>
    %c0_1 = arith.constant 0 : index
    %c0_2 = arith.constant 0 : index
    %1 = vector.load %arg3[%c0_1, %c0_2] : memref<8x128xf32, #tpu.memory_space<vmem>>, vector<1x96xf32>
    %c1 = arith.constant 1 : index
    %c0_3 = arith.constant 0 : index
    %2 = vector.load %arg3[%c1, %c0_3] : memref<8x128xf32, #tpu.memory_space<vmem>>, vector<1x64xf32>
    %c2 = arith.constant 2 : index
    %c0_4 = arith.constant 0 : index
    %3 = vector.load %arg3[%c2, %c0_4] : memref<8x128xf32, #tpu.memory_space<vmem>>, vector<1x32xf32>
    %c3 = arith.constant 3 : index
    %c0_5 = arith.constant 0 : index
    %4 = vector.load %arg3[%c3, %c0_5] : memref<8x128xf32, #tpu.memory_space<vmem>>, vector<1x32xf32>
    %c4 = arith.constant 4 : index
    %c0_6 = arith.constant 0 : index
    %5 = vector.load %arg3[%c4, %c0_6] : memref<8x128xf32, #tpu.memory_space<vmem>>, vector<1x32xf32>
    %c5 = arith.constant 5 : index
    %c0_7 = arith.constant 0 : index
    %6 = vector.load %arg3[%c5, %c0_7] : memref<8x128xf32, #tpu.memory_space<vmem>>, vector<1x32xf32>
    %c6 = arith.constant 6 : index
    %c0_8 = arith.constant 0 : index
    %7 = vector.load %arg3[%c6, %c0_8] : memref<8x128xf32, #tpu.memory_space<vmem>>, vector<1x32xf32>
    %c7 = arith.constant 7 : index
    %c0_9 = arith.constant 0 : index
    %8 = vector.load %arg3[%c7, %c0_9] : memref<8x128xf32, #tpu.memory_space<vmem>>, vector<1x32xf32>
    %c0_10 = arith.constant 0 : index
    %c0_11 = arith.constant 0 : index
    %9 = vector.load %arg1[%c0_10, %c0_11] : memref<32x384xf32, #tpu.memory_space<vmem>>, vector<32x96xf32>
    %c0_12 = arith.constant 0 : index
    %c128 = arith.constant 128 : index
    %10 = vector.load %arg1[%c0_12, %c128] : memref<32x384xf32, #tpu.memory_space<vmem>>, vector<32x64xf32>
    %c0_13 = arith.constant 0 : index
    %c256 = arith.constant 256 : index
    %11 = vector.load %arg1[%c0_13, %c256] : memref<32x384xf32, #tpu.memory_space<vmem>>, vector<32x32xf32>
    %cst = arith.constant dense<0.000000e+00> : vector<16x96xf32>
    %12 = tpu.matmul %0, %9, %cst {dimension_numbers = #tpu.dot_dimension_numbers<[1], [0], [0], [1], [0, 0, 1, 1], [], []>} : vector<16x32xf32>, vector<32x96xf32>, vector<16x96xf32> -> vector<16x96xf32>
    %13 = vector.broadcast %1 : vector<1x96xf32> to vector<16x96xf32>
    %14 = arith.addf %12, %13 : vector<16x96xf32>
    %15 = vector.extract_strided_slice %14 {offsets = [0, 0], sizes = [8, 8], strides = [1, 1]} : vector<16x96xf32> to vector<8x8xf32>
    %16 = vector.extract_strided_slice %14 {offsets = [0, 8], sizes = [8, 8], strides = [1, 1]} : vector<16x96xf32> to vector<8x8xf32>
    %17 = vector.extract_strided_slice %14 {offsets = [0, 16], sizes = [8, 8], strides = [1, 1]} : vector<16x96xf32> to vector<8x8xf32>
    %18 = vector.extract_strided_slice %14 {offsets = [0, 24], sizes = [8, 8], strides = [1, 1]} : vector<16x96xf32> to vector<8x8xf32>
    %19 = vector.extract_strided_slice %14 {offsets = [8, 0], sizes = [8, 8], strides = [1, 1]} : vector<16x96xf32> to vector<8x8xf32>
    %20 = vector.extract_strided_slice %14 {offsets = [8, 8], sizes = [8, 8], strides = [1, 1]} : vector<16x96xf32> to vector<8x8xf32>
    %21 = vector.extract_strided_slice %14 {offsets = [8, 16], sizes = [8, 8], strides = [1, 1]} : vector<16x96xf32> to vector<8x8xf32>
    %22 = vector.extract_strided_slice %14 {offsets = [8, 24], sizes = [8, 8], strides = [1, 1]} : vector<16x96xf32> to vector<8x8xf32>
    %23 = vector.shape_cast %15 : vector<8x8xf32> to vector<1x8x8xf32>
    %24 = vector.shape_cast %16 : vector<8x8xf32> to vector<1x8x8xf32>
    %25 = vector.shape_cast %17 : vector<8x8xf32> to vector<1x8x8xf32>
    %26 = vector.shape_cast %18 : vector<8x8xf32> to vector<1x8x8xf32>
    %27 = vector.shape_cast %19 : vector<8x8xf32> to vector<1x8x8xf32>
    %28 = vector.shape_cast %20 : vector<8x8xf32> to vector<1x8x8xf32>
    %29 = vector.shape_cast %21 : vector<8x8xf32> to vector<1x8x8xf32>
    %30 = vector.shape_cast %22 : vector<8x8xf32> to vector<1x8x8xf32>
    %31 = tpu.concatenate %23, %24, %25, %26, %27, %28, %29, %30 in 0 : vector<1x8x8xf32>, vector<1x8x8xf32>, vector<1x8x8xf32>, vector<1x8x8xf32>, vector<1x8x8xf32>, vector<1x8x8xf32>, vector<1x8x8xf32>, vector<1x8x8xf32> -> vector<8x8x8xf32>
    %32 = vector.extract_strided_slice %14 {offsets = [0, 32], sizes = [8, 8], strides = [1, 1]} : vector<16x96xf32> to vector<8x8xf32>
    %33 = vector.extract_strided_slice %14 {offsets = [0, 40], sizes = [8, 8], strides = [1, 1]} : vector<16x96xf32> to vector<8x8xf32>
    %34 = vector.extract_strided_slice %14 {offsets = [0, 48], sizes = [8, 8], strides = [1, 1]} : vector<16x96xf32> to vector<8x8xf32>
    %35 = vector.extract_strided_slice %14 {offsets = [0, 56], sizes = [8, 8], strides = [1, 1]} : vector<16x96xf32> to vector<8x8xf32>
    %36 = vector.extract_strided_slice %14 {offsets = [8, 32], sizes = [8, 8], strides = [1, 1]} : vector<16x96xf32> to vector<8x8xf32>
    %37 = vector.extract_strided_slice %14 {offsets = [8, 40], sizes = [8, 8], strides = [1, 1]} : vector<16x96xf32> to vector<8x8xf32>
    %38 = vector.extract_strided_slice %14 {offsets = [8, 48], sizes = [8, 8], strides = [1, 1]} : vector<16x96xf32> to vector<8x8xf32>
    %39 = vector.extract_strided_slice %14 {offsets = [8, 56], sizes = [8, 8], strides = [1, 1]} : vector<16x96xf32> to vector<8x8xf32>
    %40 = vector.shape_cast %32 : vector<8x8xf32> to vector<1x8x8xf32>
    %41 = vector.shape_cast %33 : vector<8x8xf32> to vector<1x8x8xf32>
    %42 = vector.shape_cast %34 : vector<8x8xf32> to vector<1x8x8xf32>
    %43 = vector.shape_cast %35 : vector<8x8xf32> to vector<1x8x8xf32>
    %44 = vector.shape_cast %36 : vector<8x8xf32> to vector<1x8x8xf32>
    %45 = vector.shape_cast %37 : vector<8x8xf32> to vector<1x8x8xf32>
    %46 = vector.shape_cast %38 : vector<8x8xf32> to vector<1x8x8xf32>
    %47 = vector.shape_cast %39 : vector<8x8xf32> to vector<1x8x8xf32>
    %48 = tpu.concatenate %40, %41, %42, %43, %44, %45, %46, %47 in 0 : vector<1x8x8xf32>, vector<1x8x8xf32>, vector<1x8x8xf32>, vector<1x8x8xf32>, vector<1x8x8xf32>, vector<1x8x8xf32>, vector<1x8x8xf32>, vector<1x8x8xf32> -> vector<8x8x8xf32>
    %49 = vector.extract_strided_slice %14 {offsets = [0, 64], sizes = [8, 8], strides = [1, 1]} : vector<16x96xf32> to vector<8x8xf32>
    %50 = vector.extract_strided_slice %14 {offsets = [0, 72], sizes = [8, 8], strides = [1, 1]} : vector<16x96xf32> to vector<8x8xf32>
    %51 = vector.extract_strided_slice %14 {offsets = [0, 80], sizes = [8, 8], strides = [1, 1]} : vector<16x96xf32> to vector<8x8xf32>
    %52 = vector.extract_strided_slice %14 {offsets = [0, 88], sizes = [8, 8], strides = [1, 1]} : vector<16x96xf32> to vector<8x8xf32>
    %53 = vector.extract_strided_slice %14 {offsets = [8, 64], sizes = [8, 8], strides = [1, 1]} : vector<16x96xf32> to vector<8x8xf32>
    %54 = vector.extract_strided_slice %14 {offsets = [8, 72], sizes = [8, 8], strides = [1, 1]} : vector<16x96xf32> to vector<8x8xf32>
    %55 = vector.extract_strided_slice %14 {offsets = [8, 80], sizes = [8, 8], strides = [1, 1]} : vector<16x96xf32> to vector<8x8xf32>
    %56 = vector.extract_strided_slice %14 {offsets = [8, 88], sizes = [8, 8], strides = [1, 1]} : vector<16x96xf32> to vector<8x8xf32>
    %57 = vector.shape_cast %49 : vector<8x8xf32> to vector<1x8x8xf32>
    %58 = vector.shape_cast %50 : vector<8x8xf32> to vector<1x8x8xf32>
    %59 = vector.shape_cast %51 : vector<8x8xf32> to vector<1x8x8xf32>
    %60 = vector.shape_cast %52 : vector<8x8xf32> to vector<1x8x8xf32>
    %61 = vector.shape_cast %53 : vector<8x8xf32> to vector<1x8x8xf32>
    %62 = vector.shape_cast %54 : vector<8x8xf32> to vector<1x8x8xf32>
    %63 = vector.shape_cast %55 : vector<8x8xf32> to vector<1x8x8xf32>
    %64 = vector.shape_cast %56 : vector<8x8xf32> to vector<1x8x8xf32>
    %65 = tpu.concatenate %57, %58, %59, %60, %61, %62, %63, %64 in 0 : vector<1x8x8xf32>, vector<1x8x8xf32>, vector<1x8x8xf32>, vector<1x8x8xf32>, vector<1x8x8xf32>, vector<1x8x8xf32>, vector<1x8x8xf32>, vector<1x8x8xf32> -> vector<8x8x8xf32>
    "tpu.trace_start"() <{level = 10 : i32, message = "bqd,bkd->bqk"}> : () -> ()
    %cst_14 = arith.constant dense<0.000000e+00> : vector<8x8x8xf32>
    %66 = tpu.matmul %31, %48, %cst_14 {dimension_numbers = #tpu.dot_dimension_numbers<[2], [2], [1], [1], [0, 0, 0, 1, 1, 1], [0], [0]>} : vector<8x8x8xf32>, vector<8x8x8xf32>, vector<8x8x8xf32> -> vector<8x8x8xf32>
    "tpu.trace_stop"() : () -> ()
    %cst_15 = arith.constant dense<0xFF800000> : vector<8x8xf32>
    %67 = vector.multi_reduction <maximumf>, %66, %cst_15 [2] : vector<8x8x8xf32> to vector<8x8xf32>
    %68 = vector.shape_cast %67 : vector<8x8xf32> to vector<8x8x1xf32>
    %69 = vector.broadcast %68 : vector<8x8x1xf32> to vector<8x8x8xf32>
    %70 = arith.subf %66, %69 : vector<8x8x8xf32>
    %71 = math.exp %70 : vector<8x8x8xf32>
    %cst_16 = arith.constant dense<0.000000e+00> : vector<8x8xf32>
    %72 = vector.multi_reduction <add>, %71, %cst_16 [2] : vector<8x8x8xf32> to vector<8x8xf32>
    %73 = vector.shape_cast %72 : vector<8x8xf32> to vector<8x8x1xf32>
    %74 = vector.broadcast %73 : vector<8x8x1xf32> to vector<8x8x8xf32>
    %75 = arith.divf %71, %74 : vector<8x8x8xf32>
    %c0_17 = arith.constant 0 : index
    %c0_18 = arith.constant 0 : index
    %c0_19 = arith.constant 0 : index
    %76 = vector.load %arg5[%c0_17, %c0_18, %c0_19] : memref<8x8x8xf32, #tpu.memory_space<vmem>>, vector<8x8x8xf32>
    tpu.vector_store %arg5[%c0_17, %c0_18, %c0_19], %75 {strides = array<i32>} : memref<8x8x8xf32, #tpu.memory_space<vmem>>, vector<8x8x8xf32>,
    "tpu.trace_start"() <{level = 10 : i32, message = "bqk,bkd->bqd"}> : () -> ()
    %cst_20 = arith.constant dense<0.000000e+00> : vector<8x8x8xf32>
    %77 = tpu.matmul %75, %65, %cst_20 {dimension_numbers = #tpu.dot_dimension_numbers<[2], [1], [1], [2], [0, 0, 0, 1, 1, 2], [0], [0]>} : vector<8x8x8xf32>, vector<8x8x8xf32>, vector<8x8x8xf32> -> vector<8x8x8xf32>
    "tpu.trace_stop"() : () -> ()
    %78 = vector.extract_strided_slice %77 {offsets = [0, 0, 0], sizes = [1, 8, 8], strides = [1, 1, 1]} : vector<8x8x8xf32> to vector<1x8x8xf32>
    %79 = vector.shape_cast %78 : vector<1x8x8xf32> to vector<8x8xf32>
    %80 = vector.extract_strided_slice %77 {offsets = [1, 0, 0], sizes = [1, 8, 8], strides = [1, 1, 1]} : vector<8x8x8xf32> to vector<1x8x8xf32>
    %81 = vector.shape_cast %80 : vector<1x8x8xf32> to vector<8x8xf32>
    %82 = vector.extract_strided_slice %77 {offsets = [2, 0, 0], sizes = [1, 8, 8], strides = [1, 1, 1]} : vector<8x8x8xf32> to vector<1x8x8xf32>
    %83 = vector.shape_cast %82 : vector<1x8x8xf32> to vector<8x8xf32>
    %84 = vector.extract_strided_slice %77 {offsets = [3, 0, 0], sizes = [1, 8, 8], strides = [1, 1, 1]} : vector<8x8x8xf32> to vector<1x8x8xf32>
    %85 = vector.shape_cast %84 : vector<1x8x8xf32> to vector<8x8xf32>
    %86 = tpu.concatenate %79, %81, %83, %85 in 1 : vector<8x8xf32>, vector<8x8xf32>, vector<8x8xf32>, vector<8x8xf32> -> vector<8x32xf32>
    %87 = vector.extract_strided_slice %77 {offsets = [4, 0, 0], sizes = [1, 8, 8], strides = [1, 1, 1]} : vector<8x8x8xf32> to vector<1x8x8xf32>
    %88 = vector.shape_cast %87 : vector<1x8x8xf32> to vector<8x8xf32>
    %89 = vector.extract_strided_slice %77 {offsets = [5, 0, 0], sizes = [1, 8, 8], strides = [1, 1, 1]} : vector<8x8x8xf32> to vector<1x8x8xf32>
    %90 = vector.shape_cast %89 : vector<1x8x8xf32> to vector<8x8xf32>
    %91 = vector.extract_strided_slice %77 {offsets = [6, 0, 0], sizes = [1, 8, 8], strides = [1, 1, 1]} : vector<8x8x8xf32> to vector<1x8x8xf32>
    %92 = vector.shape_cast %91 : vector<1x8x8xf32> to vector<8x8xf32>
    %93 = vector.extract_strided_slice %77 {offsets = [7, 0, 0], sizes = [1, 8, 8], strides = [1, 1, 1]} : vector<8x8x8xf32> to vector<1x8x8xf32>
    %94 = vector.shape_cast %93 : vector<1x8x8xf32> to vector<8x8xf32>
    %95 = tpu.concatenate %88, %90, %92, %94 in 1 : vector<8x8xf32>, vector<8x8xf32>, vector<8x8xf32>, vector<8x8xf32> -> vector<8x32xf32>
    %96 = tpu.concatenate %86, %95 in 0 : vector<8x32xf32>, vector<8x32xf32> -> vector<16x32xf32>
    %cst_21 = arith.constant dense<0.000000e+00> : vector<16x32xf32>
    %97 = tpu.matmul %96, %11, %cst_21 {dimension_numbers = #tpu.dot_dimension_numbers<[1], [0], [0], [1], [0, 0, 1, 1], [], []>} : vector<16x32xf32>, vector<32x32xf32>, vector<16x32xf32> -> vector<16x32xf32>
    %98 = vector.broadcast %3 : vector<1x32xf32> to vector<16x32xf32>
    %99 = arith.addf %97, %98 : vector<16x32xf32>
    %100 = arith.addf %0, %99 : vector<16x32xf32>
    %cst_22 = arith.constant dense<0.000000e+00> : vector<16xf32>
    %101 = vector.multi_reduction <add>, %100, %cst_22 [1] : vector<16x32xf32> to vector<16xf32>
    %102 = vector.shape_cast %101 : vector<16xf32> to vector<16x1xf32>
    %cst_23 = arith.constant 3.200000e+01 : f32
    %103 = vector.broadcast %cst_23 : f32 to vector<16x1xf32>
    %104 = arith.divf %102, %103 : vector<16x1xf32>
    %105 = vector.broadcast %104 : vector<16x1xf32> to vector<16x32xf32>
    %106 = arith.subf %100, %105 : vector<16x32xf32>
    %107 = arith.mulf %106, %106 : vector<16x32xf32>
    %cst_24 = arith.constant dense<0.000000e+00> : vector<16xf32>
    %108 = vector.multi_reduction <add>, %107, %cst_24 [1] : vector<16x32xf32> to vector<16xf32>
    %109 = vector.shape_cast %108 : vector<16xf32> to vector<16x1xf32>
    %cst_25 = arith.constant 3.100000e+01 : f32
    %110 = vector.broadcast %cst_25 : f32 to vector<16x1xf32>
    %111 = arith.divf %109, %110 : vector<16x1xf32>
    %112 = math.sqrt %111 : vector<16x1xf32>
    %cst_26 = arith.constant 9.99999996E-13 : f32
    %113 = vector.broadcast %cst_26 : f32 to vector<16x1xf32>
    %114 = arith.addf %112, %113 : vector<16x1xf32>
    %115 = vector.broadcast %114 : vector<16x1xf32> to vector<16x32xf32>
    %116 = arith.divf %106, %115 : vector<16x32xf32>
    %117 = vector.broadcast %5 : vector<1x32xf32> to vector<16x32xf32>
    %118 = arith.mulf %117, %116 : vector<16x32xf32>
    %119 = vector.broadcast %6 : vector<1x32xf32> to vector<16x32xf32>
    %120 = arith.addf %118, %119 : vector<16x32xf32>
    %cst_27 = arith.constant dense<0.000000e+00> : vector<16x64xf32>
    %121 = tpu.matmul %120, %10, %cst_27 {dimension_numbers = #tpu.dot_dimension_numbers<[1], [0], [0], [1], [0, 0, 1, 1], [], []>} : vector<16x32xf32>, vector<32x64xf32>, vector<16x64xf32> -> vector<16x64xf32>
    %122 = vector.broadcast %2 : vector<1x64xf32> to vector<16x64xf32>
    %123 = arith.addf %121, %122 : vector<16x64xf32>
    %cst_28 = arith.constant 0.000000e+00 : f32
    %124 = vector.broadcast %cst_28 : f32 to vector<16x64xf32>
    %125 = arith.maximumf %123, %124 : vector<16x64xf32>
    %c0_29 = arith.constant 0 : index
    %c0_30 = arith.constant 0 : index
    %126 = vector.load %arg2[%c0_29, %c0_30] : memref<64x32xf32, #tpu.memory_space<vmem>>, vector<64x32xf32>
    %cst_31 = arith.constant dense<0.000000e+00> : vector<16x32xf32>
    %127 = tpu.matmul %125, %126, %cst_31 {dimension_numbers = #tpu.dot_dimension_numbers<[1], [0], [0], [1], [0, 0, 1, 1], [], []>} : vector<16x64xf32>, vector<64x32xf32>, vector<16x32xf32> -> vector<16x32xf32>
    %128 = vector.broadcast %4 : vector<1x32xf32> to vector<16x32xf32>
    %129 = arith.addf %127, %128 : vector<16x32xf32>
    %130 = arith.addf %120, %129 : vector<16x32xf32>
    %cst_32 = arith.constant dense<0.000000e+00> : vector<16xf32>
    %131 = vector.multi_reduction <add>, %130, %cst_32 [1] : vector<16x32xf32> to vector<16xf32>
    %132 = vector.shape_cast %131 : vector<16xf32> to vector<16x1xf32>
    %cst_33 = arith.constant 3.200000e+01 : f32
    %133 = vector.broadcast %cst_33 : f32 to vector<16x1xf32>
    %134 = arith.divf %132, %133 : vector<16x1xf32>
    %135 = vector.broadcast %134 : vector<16x1xf32> to vector<16x32xf32>
    %136 = arith.subf %130, %135 : vector<16x32xf32>
    %137 = arith.mulf %136, %136 : vector<16x32xf32>
    %cst_34 = arith.constant dense<0.000000e+00> : vector<16xf32>
    %138 = vector.multi_reduction <add>, %137, %cst_34 [1] : vector<16x32xf32> to vector<16xf32>
    %139 = vector.shape_cast %138 : vector<16xf32> to vector<16x1xf32>
    %cst_35 = arith.constant 3.100000e+01 : f32
    %140 = vector.broadcast %cst_35 : f32 to vector<16x1xf32>
    %141 = arith.divf %139, %140 : vector<16x1xf32>
    %142 = math.sqrt %141 : vector<16x1xf32>
    %cst_36 = arith.constant 9.99999996E-13 : f32
    %143 = vector.broadcast %cst_36 : f32 to vector<16x1xf32>
    %144 = arith.addf %142, %143 : vector<16x1xf32>
    %145 = vector.broadcast %144 : vector<16x1xf32> to vector<16x32xf32>
    %146 = arith.divf %136, %145 : vector<16x32xf32>
    %147 = vector.broadcast %7 : vector<1x32xf32> to vector<16x32xf32>
    %148 = arith.mulf %147, %146 : vector<16x32xf32>
    %149 = vector.broadcast %8 : vector<1x32xf32> to vector<16x32xf32>
    %150 = arith.addf %148, %149 : vector<16x32xf32>
    %c0_37 = arith.constant 0 : index
    %c0_38 = arith.constant 0 : index
    %151 = vector.load %arg4[%c0_37, %c0_38] : memref<16x32xf32, #tpu.memory_space<vmem>>, vector<16x32xf32>
    tpu.vector_store %arg4[%c0_37, %c0_38], %150 {strides = array<i32>} : memref<16x32xf32, #tpu.memory_space<vmem>>, vector<16x32xf32>,
    return
  }
}

</mosaic_0001>

<bundles_post_ra>
// kernel: tpu_custom_call.1
= control target key start
LH: loop header
LB: loop body
LE: loop exit
PB: predicated region body
PF: predicated region fallthrough
CT: control target
= control target key end

     0   :  { %11 = vsyncpa [#allocation3], 0  ;;  %s1658_s0 = inlined_call_operand.hbm [shape: f32[16,32], index: 0, kind: input, shape index: {}]   ;;  %s1659_s1 = inlined_call_operand.vmem [shape: f32[32,384], index: 1, kind: input, shape index: {}]   ;;  %s1660_s2 = inlined_call_operand.vmem [shape: f32[64,32], index: 2, kind: input, shape index: {}]   ;;  %s1661_s3 = inlined_call_operand.hbm [shape: f32[8,128], index: 3, kind: input, shape index: {}]   ;;  %s1662_s4 = inlined_call_operand.hbm [shape: f32[16,32], index: 4, kind: output, shape index: {0}]   ;;  %s1663_s5 = inlined_call_operand.hbm [shape: f32[8,8,8], index: 5, kind: output, shape index: {1}]  }
   0x1   :  { %12 = vsyncpa [#allocation6], 0 }
   0x2   :  { %13 = vsyncpa [#allocation4], 0 }
   0x3   :  { %14 = vsyncpa [#allocation9], 0  ;;  %s19_s20 = sshll.u32 %s1658_s0, 4  ;;  %s1316_s21 = smov [#allocation2]   ;;  %s20_s20 = int_to_ptr.hbm [resolvable:$true] %s19_s20 }
   0x4   :  { %s21_s22 = sshll.u32 %s1316_s21, 4  ;;  %s37_s25 = sshll.u32 %s1661_s3, 4  ;;  %s22_s22 = int_to_ptr.vmem [resolvable:$true] %s21_s22  ;;  %s38_s25 = int_to_ptr.hbm [resolvable:$true] %s37_s25 }
   0x5   :  { %s1317_s26 = smov 128   ;;  %s1318_s27 = smov 8  }
   0x6   :  { %27 = dma.hbm_to_vmem [thread:$0]  %s20_s20, 256, %s22_s22, [#allocation3], %s1317_s26, %s1317_s26, %s1318_s27  }
   0x7   :  { %s1319_s28 = smov [#allocation5]  }
   0x8   :  { %s39_s29 = sshll.u32 %s1319_s28, 4  ;;  %s40_s29 = int_to_ptr.vmem [resolvable:$true] %s39_s29 }
   0x9   :  { %42 = dma.hbm_to_vmem [thread:$0]  %s38_s25, 128, %s40_s29, [#allocation6]  }
   0xa   :  { %1308 = dma.done.wait [#allocation3], 256  }
   0xb   :  { %1309 = vsyncadd [#allocation3], 4294967040 }
   0xc   :  { %1310 = dma.done.wait [#allocation6], 128  }
   0xd   :  { %1311 = vsyncadd [#allocation6], 4294967168  ;;  %v64_v0 = vld [vmem:[%s1659_s1 + $0x48] sm:$0xff]  ;;  %v63_v1 = vld [vmem:[%s1659_s1 + $0x30] sm:$0xff]  ;;  %vm74_vm0 = vcmask 261120   ;;  %s1320_s11 = smov 104  }
   0xe   :  { %93 = vmatpush.msra.mxu0 %v64_v0  ;;  %v62_v2 = vld [vmem:[%s1659_s1 + $0x18] sm:$0xff]  ;;  %v61_v3 = vld [vmem:[%s1659_s1] sm:$0xff]  ;;  %v1386_v5 = vld [vmem:[#allocation2 + $0x8] sm:$0xff]  ;;  %s1321_s12 = smov 120   ;;  %s1322_s13 = smov 112   ;;  %vm120_vm1 = vcmask 64512  }
   0xf   :  { %v1382_v4 = vld [vmem:[#allocation2] sm:$0xff]  ;;  %v1152_v6 = vld [vmem:[#allocation5] ss:$0 sm:$0xff]  ;;  %s1323_s14 = smov 96   ;;  %s1324_s15 = smov 64  }
  0x10   :  { %94 = vmatpush.msra.mxu0 %v63_v1  ;;  %s1325_s16 = smov 24   ;;  %s1326_s17 = smov 16  }
  0x11   :  { %s1071_s29 = sshll.u32 %s1663_s5, 4  ;;  %s1330_s5 = smov [#allocation7]   ;;  %s1072_s29 = int_to_ptr.hbm [resolvable:$true] %s1071_s29 }
  0x12   :  { %95 = vmatpush.msra.mxu0 %v62_v2  ;;  %s1056_s0 = sshll.u32 %s1330_s5, 4  ;;  %s1058_s6 = sshll.u32 %s1662_s4, 4  ;;  %s1057_s0 = int_to_ptr.vmem [resolvable:$true] %s1056_s0  ;;  %s1059_s6 = int_to_ptr.hbm [resolvable:$true] %s1058_s6 }
  0x14   :  { %96 = vmatpush.msra.mxu0 %v61_v3 }
  0x15   :  { %1090 = vmatmul.msk.f32.vlgmr.msra.gmra.mxu0 %vm74_vm0, %v1382_v4 }
  0x1d   :  { %1091 = vmatmul.msk.f32.gmra.mxu0 %vm74_vm0, %v1386_v5 }
  0x92   :  { %v98_v7 = vpop.f32.mrf.mxu0 }
  0x93   :  { %v1390_v8 = vadd.f32 %v1152_v6, %v98_v7 }
  0x95   :  { %109 = vrot.lane.b32.xlu1 %v1390_v8, %s1320_s11  ;;  %105 = vrot.lane.b32.xlu0 %v1390_v8, %s1321_s12 }
  0x9a   :  { %v101_v9 = vpop.f32.mrf.mxu0 }
  0x9b   :  { %v1394_v10 = vadd.f32 %v1152_v6, %v101_v9 }
  0x9d   :  { %116 = vrot.lane.b32.xlu1 %v1394_v10, %s1320_s11  ;;  %107 = vrot.lane.b32.xlu0 %v1390_v8, %s1322_s13 }
  0x9e   :  { %112 = vrot.lane.b32.xlu2 %v1394_v10, %s1321_s12 }
  0xa5   :  { %118 = vrot.lane.b32.xlu0 %v1390_v8, %s1323_s14 }
  0xa6   :  { %114 = vrot.lane.b32.xlu2 %v1394_v10, %s1322_s13 }
  0xae   :  { %223 = vrot.lane.b32.xlu2 %v1394_v10, %s1323_s14 }
  0xf8   :  { %v1407_v13 = vpop.permute.xlu2 %112 }
 0x100   :  { %v1416_v16 = vpop.permute.xlu2 %114 }
 0x107   :  { %v1402_v11 = vpop.permute.xlu1 %109  ;;  %v1404_v12 = vpop.permute.xlu0 %105 }
 0x108   :  { %145 = vrot.lane.b32.xlu1 %v1404_v12, %s1323_s14  ;;  %v224_v18 = vpop.permute.xlu2 %223 }
 0x10f   :  { %v1409_v14 = vpop.permute.xlu0 %107  ;;  %v1411_v15 = vpop.permute.xlu1 %116 }
 0x110   :  { %197 = vrot.lane.b32.xlu1 %v1402_v11, %s1323_s14  ;;  %171 = vrot.lane.b32.xlu0 %v1409_v14, %s1323_s14 }
 0x111   :  { %301 = vrot.lane.b32.xlu2 %v1411_v15, %s1323_s14 }
 0x117   :  { %v119_v17 = vpop.permute.xlu0 %118 }
 0x118   :  { %275 = vrot.lane.b32.xlu1 %v1416_v16, %s1323_s14  ;;  %249 = vrot.lane.b32.xlu0 %v1407_v13, %s1323_s14 }
 0x119   :  { %1092 = vmatpush.xpose.msk.msra.mxu2 %vm120_vm1, %v119_v17  ;;  %v1137_v17 = vpack.i.bf16 %v1404_v12, %v1402_v11 }
 0x11c   :  { %1093 = vmatmul.msk.f32.vlgmr.msra.gmra.mxu2 %vm120_vm1, %v1390_v8 }
 0x16b   :  { %v302_v20 = vpop.permute.xlu2 %301 }
 0x17a   :  { %v146_v19 = vpop.permute.xlu1 %145 }
 0x17b   :  { %1094 = vmatpush.xpose.msk.msrb.mxu2 %vm120_vm1, %v146_v19  ;;  %v1142_v19 = vpack.i.bf16 %v1411_v15, %v1409_v14 }
 0x17e   :  { %1095 = vmatmul.msk.f32.vlgmr.msrb.gmra.mxu2 %vm120_vm1, %v1404_v12 }
 0x17f   :  { %1100 = vmatpush.xpose.msk.msra.mxu2 %vm120_vm1, %v224_v18  ;;  %v1147_v18 = vpack.i.bf16 %v1416_v16, %v1407_v13 }
 0x182   :  { %v198_v21 = vpop.permute.xlu1 %197  ;;  %v172_v22 = vpop.permute.xlu0 %171 }
 0x183   :  { %1106 = vmatpush.xpose.msk.msrb.mxu2 %vm120_vm1, %v302_v20  ;;  %1096 = vmatpush.xpose.msk.msra.mxu3 %vm120_vm1, %v172_v22 }
 0x184   :  { %1098 = vmatpush.xpose.msk.msra.mxu1 %vm120_vm1, %v198_v21 }
 0x186   :  { %1097 = vmatmul.msk.f32.vlgmr.msra.gmra.mxu3 %vm120_vm1, %v1409_v14  ;;  %1101 = vmatmul.msk.f32.vlgmr.msra.gmra.mxu2 %vm120_vm1, %v1394_v10 }
 0x187   :  { %1099 = vmatmul.msk.f32.vlgmr.msra.gmra.mxu1 %vm120_vm1, %v1402_v11 }
 0x18a   :  { %v276_v23 = vpop.permute.xlu1 %275  ;;  %v250_v24 = vpop.permute.xlu0 %249 }
 0x18b   :  { %1102 = vmatpush.xpose.msk.msrb.mxu3 %vm120_vm1, %v250_v24  ;;  %1104 = vmatpush.xpose.msk.msrb.mxu1 %vm120_vm1, %v276_v23 }
 0x18e   :  { %1103 = vmatmul.msk.f32.vlgmr.msrb.gmra.mxu3 %vm120_vm1, %v1407_v13  ;;  %1107 = vmatmul.msk.f32.vlgmr.msrb.gmra.mxu2 %vm120_vm1, %v1411_v15 }
 0x18f   :  { %1105 = vmatmul.msk.f32.vlgmr.msrb.gmra.mxu1 %vm120_vm1, %v1416_v16 }
 0x19f   :  { %v1444_v25 = vpop.f32.mrf.mxu2 }
 0x1a0   :  { %v327_v36 = vsel %vm120_vm1, %v1444_v25, -inf }
 0x201   :  { %v168_v26 = vpop.f32.mrf.mxu2 }
 0x202   :  { %v330_v27 = vsel %vm120_vm1, %v168_v26, -inf }
 0x203   :  { %331 = vmax.xlane.f32.xlu0 %v330_v27 }
 0x204   :  { %v220_v28 = vpop.f32.mrf.mxu1 }
 0x205   :  { %v336_v29 = vsel %vm120_vm1, %v220_v28, -inf }
 0x206   :  { %337 = vmax.xlane.f32.xlu2 %v336_v29 }
 0x209   :  { %v194_v30 = vpop.f32.mrf.mxu3  ;;  %v1448_v31 = vpop.f32.mrf.mxu2 }
 0x20a   :  { %v333_v32 = vsel %vm120_vm1, %v194_v30, -inf  ;;  %v339_v40 = vsel %vm120_vm1, %v1448_v31, -inf }
 0x20b   :  { %334 = vmax.xlane.f32.xlu1 %v333_v32 }
 0x20c   :  { %v298_v33 = vpop.f32.mrf.mxu1 }
 0x20d   :  { %v345_v34 = vsel %vm120_vm1, %v298_v33, -inf }
 0x20e   :  { %346 = vmax.xlane.f32.xlu0 %v345_v34 }
 0x211   :  { %v324_v35 = vpop.f32.mrf.mxu2  ;;  %v272_v38 = vpop.f32.mrf.mxu3 }
 0x212   :  { %v348_v37 = vsel %vm120_vm1, %v324_v35, -inf  ;;  %v342_v39 = vsel %vm120_vm1, %v272_v38, -inf }
 0x213   :  { %328 = vmax.xlane.f32.xlu1 %v327_v36  ;;  %349 = vmax.xlane.f32.xlu2 %v348_v37 }
 0x21b   :  { %343 = vmax.xlane.f32.xlu2 %v342_v39 }
 0x223   :  { %340 = vmax.xlane.f32.xlu2 %v339_v40 }
 0x276   :  { %v332_v41 = vpop.xlane.xlu0 %331 }
 0x277   :  { %v352_v42 = vsub.f32 %v168_v26, %v332_v41 }
 0x279   :  { %v338_v43 = vpop.xlane.xlu2 %337  ;;  %v361_v44 = vmul.f32 1.442695, %v352_v42 }
 0x27a   :  { %v354_v45 = vsub.f32 %v220_v28, %v338_v43 }
 0x27b   :  { %1160 = vpow2.f32 %v361_v44 }
 0x27c   :  { %v365_v46 = vmul.f32 1.442695, %v354_v45 }
 0x27e   :  { %1162 = vpow2.f32 %v365_v46  ;;  %v335_v47 = vpop.xlane.xlu1 %334 }
 0x27f   :  { %v353_v48 = vsub.f32 %v194_v30, %v335_v47 }
 0x281   :  { %v347_v49 = vpop.xlane.xlu0 %346  ;;  %v1458_v50 = vpop.eup %1160  ;;  %v363_v51 = vmul.f32 1.442695, %v353_v48 }
 0x282   :  { %v357_v52 = vsub.f32 %v298_v33, %v347_v49  ;;  %v378_v53 = vsel %vm120_vm1, %v1458_v50, 0.0 }
 0x283   :  { %1164 = vpow2.f32 %v363_v51  ;;  %379 = vadd.xlane.f32.xlu1 %v378_v53 }
 0x284   :  { %v1462_v54 = vpop.eup %1162  ;;  %v371_v56 = vmul.f32 1.442695, %v357_v52 }
 0x285   :  { %v384_v55 = vsel %vm120_vm1, %v1462_v54, 0.0 }
 0x286   :  { %385 = vadd.xlane.f32.xlu0 %v384_v55  ;;  %v350_v57 = vpop.xlane.xlu2 %349  ;;  %1166 = vpow2.f32 %v371_v56  ;;  %v329_v20 = vpop.xlane.xlu1 %328 }
 0x287   :  { %v358_v58 = vsub.f32 %v324_v35, %v350_v57  ;;  %v351_v21 = vsub.f32 %v1444_v25, %v329_v20 }
 0x289   :  { %v1466_v59 = vpop.eup %1164  ;;  %v373_v60 = vmul.f32 1.442695, %v358_v58  ;;  %v359_v22 = vmul.f32 1.442695, %v351_v21 }
 0x28a   :  { %v381_v61 = vsel %vm120_vm1, %v1466_v59, 0.0 }
 0x28b   :  { %382 = vadd.xlane.f32.xlu2 %v381_v61  ;;  %1168 = vpow2.f32 %v373_v60 }
 0x28c   :  { %v1470_v62 = vpop.eup %1166 }
 0x28d   :  { %v393_v3 = vsel %vm120_vm1, %v1470_v62, 0.0 }
 0x28e   :  { %v344_v63 = vpop.xlane.xlu2 %343 }
 0x28f   :  { %v356_v0 = vsub.f32 %v272_v38, %v344_v63 }
 0x291   :  { %v1472_v1 = vpop.eup %1168  ;;  %v369_v2 = vmul.f32 1.442695, %v356_v0 }
 0x292   :  { %v396_v6 = vsel %vm120_vm1, %v1472_v1, 0.0 }
 0x293   :  { %394 = vadd.xlane.f32.xlu2 %v393_v3  ;;  %1170 = vpow2.f32 %v369_v2  ;;  %397 = vadd.xlane.f32.xlu0 %v396_v6 }
 0x294   :  { %1172 = vpow2.f32 %v359_v22 }
 0x296   :  { %v341_v11 = vpop.xlane.xlu2 %340 }
 0x297   :  { %v355_v12 = vsub.f32 %v1448_v31, %v341_v11 }
 0x299   :  { %v1478_v7 = vpop.eup %1170  ;;  %v367_v13 = vmul.f32 1.442695, %v355_v12 }
 0x29a   :  { %v390_v9 = vsel %vm120_vm1, %v1478_v7, 0.0  ;;  %v1492_v23 = vpop.eup %1172 }
 0x29b   :  { %391 = vadd.xlane.f32.xlu1 %v390_v9  ;;  %v375_v16 = vsel %vm120_vm1, %v1492_v23, 0.0  ;;  %1174 = vpow2.f32 %v367_v13 }
 0x2a7   :  { %1138 = vrot.lane.b32.xlu0 %v1137_v17, %s1324_s15 }
 0x2ab   :  { %1148 = vrot.lane.b32.xlu2 %v1147_v18, %s1324_s15 }
 0x2b3   :  { %527 = vrot.lane.b32.xlu2 %v1390_v8, %s1324_s15  ;;  %v1496_v8 = vpop.eup %1174 }
 0x2b4   :  { %1143 = vrot.lane.b32.xlu1 %v1142_v19, %s1324_s15 }
 0x2bb   :  { %631 = vrot.lane.b32.xlu2 %v1394_v10, %s1324_s15  ;;  %v387_v10 = vsel %vm120_vm1, %v1496_v8, 0.0 }
 0x2d1   :  { %376 = vadd.xlane.f32.xlu0 %v375_v16 }
 0x2de   :  { %388 = vadd.xlane.f32.xlu1 %v387_v10 }
 0x2f6   :  { %v380_v14 = vpop.xlane.xlu1 %379 }
 0x2f7   :  { %1176 = vrcp.f32 %v380_v14  ;;  %v425_v32 = vand.u32 2147483648, %v380_v14  ;;  %vm419_vm4 = vweird.f32 %v380_v14  ;;  %v423_v38 = vand.u32 2147483647, %v380_v14 }
 0x2f9   :  { %v386_v15 = vpop.xlane.xlu0 %385  ;;  %v426_v43 = vor.u32 1.1754944e-38, %v425_v32  ;;  %vm424_vm9 = vcmp.eq.f32.partialorder %v423_v38, 8.507059e+37 }
 0x2fa   :  { %1178 = vrcp.f32 %v386_v15  ;;  %v455_v33 = vand.u32 2147483648, %v386_v15  ;;  %v453_v36 = vand.u32 2147483647, %v386_v15  ;;  %vm449_vm6 = vweird.f32 %v386_v15 }
 0x2fc   :  { %v456_v44 = vor.u32 1.1754944e-38, %v455_v33  ;;  %vm454_vm8 = vcmp.eq.f32.partialorder %v453_v36, 8.507059e+37 }
 0x2fd   :  { %v1177_v24 = vpop.eup %1176 }
 0x2fe   :  { %v415_v25 = vmul.f32 %v1177_v24, %v380_v14  ;;  %v383_v26 = vpop.xlane.xlu2 %382  ;;  %vm420_vm2 = vweird.f32 %v1177_v24 }
 0x2ff   :  { %1180 = vrcp.f32 %v383_v26  ;;  %vm1500_vm5 = vmor %vm419_vm4, %vm420_vm2  ;;  %v438_v51 = vand.u32 2147483647, %v383_v26  ;;  %v440_v52 = vand.u32 2147483648, %v383_v26  ;;  %vm434_vm11 = vweird.f32 %v383_v26 }
 0x300   :  { %v1179_v27 = vpop.eup %1178  ;;  %v416_v28 = vsub.f32 1.0, %v415_v25 }
 0x301   :  { %v445_v29 = vmul.f32 %v1179_v27, %v386_v15  ;;  %vm450_vm3 = vweird.f32 %v1179_v27  ;;  %v441_v61 = vor.u32 1.1754944e-38, %v440_v52  ;;  %vm439_vm13 = vcmp.eq.f32.partialorder %v438_v51, 8.507059e+37 }
 0x302   :  { %v417_v30 = vmul.f32 %v1177_v24, %v416_v28  ;;  %vm451_vm7 = vmor %vm449_vm6, %vm450_vm3 }
 0x303   :  { %v446_v31 = vsub.f32 1.0, %v445_v29 }
 0x304   :  { %v418_v34 = vadd.f32 %v1177_v24, %v417_v30 }
 0x305   :  { %v447_v35 = vmul.f32 %v1179_v27, %v446_v31  ;;  %v1181_v37 = vpop.eup %1180 }
 0x306   :  { %v430_v41 = vmul.f32 %v1181_v37, %v383_v26  ;;  %v395_v42 = vpop.xlane.xlu2 %394  ;;  %v398_v45 = vpop.xlane.xlu0 %397  ;;  %v422_v46 = vsel %vm1500_vm5, %v1177_v24, %v418_v34  ;;  %vm435_vm10 = vweird.f32 %v1181_v37 }
 0x307   :  { %v448_v40 = vadd.f32 %v1179_v27, %v447_v35  ;;  %1182 = vrcp.f32 %v395_v42  ;;  %v427_v55 = vsel %vm424_vm9, %v426_v43, %v422_v46  ;;  %vm436_vm12 = vmor %vm434_vm11, %vm435_vm10  ;;  %v500_v17 = vand.u32 2147483648, %v395_v42 }
 0x308   :  { %v431_v48 = vsub.f32 1.0, %v430_v41  ;;  %1184 = vrcp.f32 %v398_v45  ;;  %v1510_v57 = vmul.f32 %v1458_v50, %v427_v55  ;;  %v498_v21 = vand.u32 2147483647, %v395_v42 }
 0x309   :  { %v452_v47 = vsel %vm451_vm7, %v1179_v27, %v448_v40  ;;  %v515_v22 = vand.u32 2147483648, %v398_v45  ;;  %v513_v12 = vand.u32 2147483647, %v398_v45  ;;  %vm494_vm2 = vweird.f32 %v395_v42 }
 0x30a   :  { %v457_v49 = vsel %vm454_vm8, %v456_v44, %v452_v47  ;;  %v432_v53 = vmul.f32 %v1181_v37, %v431_v48  ;;  %520 = vst.msk [vmem:[#allocation8 + $0x8] sm:$0xff] %vm120_vm1, %v1510_v57  ;;  %v501_v16 = vor.u32 1.1754944e-38, %v500_v17  ;;  %vm509_vm4 = vweird.f32 %v398_v45 }
 0x30b   :  { %v1507_v56 = vmul.f32 %v1462_v54, %v457_v49  ;;  %vm499_vm5 = vcmp.eq.f32.partialorder %v498_v21, 8.507059e+37  ;;  %vm514_vm7 = vcmp.eq.f32.partialorder %v513_v12, 8.507059e+37 }
 0x30c   :  { %v433_v58 = vadd.f32 %v1181_v37, %v432_v53 }
 0x30d   :  { %522 = vst.msk [vmem:[#allocation8 + $0x18] sm:$0xff] %vm120_vm1, %v1507_v56  ;;  %v1183_v60 = vpop.eup %1182 }
 0x30e   :  { %v1185_v63 = vpop.eup %1184  ;;  %v437_v0 = vsel %vm436_vm12, %v1181_v37, %v433_v58  ;;  %v490_v2 = vmul.f32 %v1183_v60, %v395_v42  ;;  %v1516_v54 = vpop.permute.xlu2 %1148  ;;  %vm495_vm14 = vweird.f32 %v1183_v60 }
 0x30f   :  { %v442_v3 = vsel %vm439_vm13, %v441_v61, %v437_v0  ;;  %v505_v50 = vmul.f32 %v1185_v63, %v398_v45  ;;  %v392_v6 = vpop.xlane.xlu1 %391  ;;  %vm510_vm15 = vweird.f32 %v1185_v63  ;;  %vm496_vm3 = vmor %vm494_vm2, %vm495_vm14  ;;  %v1150_v39 = vunpack.i.l.bf16 %v1516_v54 }
 0x310   :  { %v491_v9 = vsub.f32 1.0, %v490_v2  ;;  %1186 = vrcp.f32 %v392_v6  ;;  %v1519_v19 = vmul.f32 %v1466_v59, %v442_v3  ;;  %vm511_vm6 = vmor %vm509_vm4, %vm510_vm15  ;;  %v516_v59 = vor.u32 1.1754944e-38, %v515_v22 }
 0x311   :  { %v506_v18 = vsub.f32 1.0, %v505_v50  ;;  %v483_v32 = vand.u32 2147483647, %v392_v6  ;;  %v485_v33 = vand.u32 2147483648, %v392_v6  ;;  %vm479_vm9 = vweird.f32 %v392_v6 }
 0x312   :  { %v492_v20 = vmul.f32 %v1183_v60, %v491_v9  ;;  %521 = vst.msk [vmem:[#allocation8 + $0x10] sm:$0xff] %vm120_vm1, %v1519_v19  ;;  %v1151_v46 = vunpack.i.h.bf16 %v1516_v54 }
 0x313   :  { %v507_v11 = vmul.f32 %v1185_v63, %v506_v18  ;;  %vm484_vm11 = vcmp.eq.f32.partialorder %v483_v32, 8.507059e+37 }
 0x314   :  { %v493_v13 = vadd.f32 %v1183_v60, %v492_v20 }
 0x315   :  { %v508_v10 = vadd.f32 %v1185_v63, %v507_v11 }
 0x316   :  { %v1187_v14 = vpop.eup %1186  ;;  %v497_v15 = vsel %vm496_vm3, %v1183_v60, %v493_v13  ;;  %v528_v24 = vpop.permute.xlu2 %527  ;;  %v71_v13 = vld [vmem:[%s1659_s1 + $0x40] sm:$0xff] }
 0x317   :  { %v502_v25 = vsel %vm499_vm5, %v501_v16, %v497_v15  ;;  %v512_v26 = vsel %vm511_vm6, %v1185_v63, %v508_v10  ;;  %v475_v27 = vmul.f32 %v1187_v14, %v392_v6  ;;  %548 = vmatpush.msra.mxu3 %v528_v24  ;;  %vm480_vm8 = vweird.f32 %v1187_v14  ;;  %v70_v16 = vld [vmem:[%s1659_s1 + $0x28] sm:$0xff]  ;;  %v69_v10 = vld [vmem:[%s1659_s1 + $0x10] sm:$0xff] }
 0x318   :  { %v517_v28 = vsel %vm514_vm7, %v516_v59, %v512_v26  ;;  %v503_v29 = vmul.f32 %v1470_v62, %v502_v25  ;;  %vm481_vm10 = vmor %vm479_vm9, %vm480_vm8  ;;  %v486_v62 = vor.u32 1.1754944e-38, %v485_v33  ;;  %vm748_vm6 = vcmask 130048  }
 0x319   :  { %v476_v30 = vsub.f32 1.0, %v475_v27  ;;  %v518_v31 = vmul.f32 %v1472_v1, %v517_v28  ;;  %v1139_v34 = vpop.permute.xlu0 %1138  ;;  %vm750_vm7 = vcmask 195584  }
 0x31a   :  { %525 = vst.msk [vmem:[#allocation8 + $0x30] sm:$0xff] %vm120_vm1, %v503_v29  ;;  %v1140_v36 = vunpack.i.l.bf16 %v1139_v34  ;;  %v1141_v37 = vunpack.i.h.bf16 %v1139_v34 }
 0x31b   :  { %v477_v35 = vmul.f32 %v1187_v14, %v476_v30  ;;  %526 = vst.msk [vmem:[#allocation8 + $0x38] sm:$0xff] %vm120_vm1, %v518_v31 }
 0x31c   :  { %574 = vmatpush.msrb.mxu0 %v1141_v37  ;;  %626 = vmatpush.msra.mxu2 %v1140_v36 }
 0x31d   :  { %v478_v38 = vadd.f32 %v1187_v14, %v477_v35  ;;  %1109 = vmatmul.msk.f32.vlgmr.msrb.gmra.mxu0 %vm120_vm1, %v1510_v57  ;;  %1111 = vmatmul.msk.f32.vlgmr.msra.gmra.mxu2 %vm120_vm1, %v1507_v56  ;;  %v1153_v35 = vld [vmem:[#allocation5 + $0x2] ss:$0 sm:$0xff] }
 0x31e   :  { %v632_v1 = vpop.permute.xlu2 %631  ;;  %678 = vmatpush.msra.mxu0 %v1150_v39 }
 0x31f   :  { %v482_v40 = vsel %vm481_vm10, %v1187_v14, %v478_v38  ;;  %652 = vmatpush.msrb.mxu3 %v632_v1 }
 0x320   :  { %v487_v41 = vsel %vm484_vm11, %v486_v62, %v482_v40 }
 0x321   :  { %v488_v42 = vmul.f32 %v1478_v7, %v487_v41 }
 0x323   :  { %524 = vst.msk [vmem:[#allocation8 + $0x28] sm:$0xff] %vm120_vm1, %v488_v42 }
 0x325   :  { %1113 = vmatmul.msk.f32.vlgmr.msra.gmra.mxu0 %vm120_vm1, %v488_v42  ;;  %v1327_v42 = vmov 32.0  }
 0x326   :  { %v1144_v43 = vpop.permute.xlu1 %1143 }
 0x327   :  { %v1146_v44 = vunpack.i.h.bf16 %v1144_v43  ;;  %v1145_v45 = vunpack.i.l.bf16 %v1144_v43 }
 0x329   :  { %600 = vmatpush.msra.mxu1 %v1145_v45  ;;  %730 = vmatpush.msrb.mxu2 %v1146_v44 }
 0x32a   :  { %1110 = vmatmul.msk.f32.vlgmr.msra.gmra.mxu1 %vm120_vm1, %v1519_v19  ;;  %1115 = vmatmul.msk.f32.vlgmr.msrb.gmra.mxu2 %vm120_vm1, %v518_v31 }
 0x32b   :  { %704 = vmatpush.msrb.mxu1 %v1151_v46 }
 0x332   :  { %1114 = vmatmul.msk.f32.vlgmr.msrb.gmra.mxu1 %vm120_vm1, %v503_v29 }
 0x344   :  { %v377_v7 = vpop.xlane.xlu0 %376 }
 0x345   :  { %1188 = vrcp.f32 %v377_v7  ;;  %v410_v51 = vand.u32 2147483648, %v377_v7  ;;  %v408_v53 = vand.u32 2147483647, %v377_v7  ;;  %vm404_vm13 = vweird.f32 %v377_v7 }
 0x347   :  { %v411_v57 = vor.u32 1.1754944e-38, %v410_v51  ;;  %vm409_vm15 = vcmp.eq.f32.partialorder %v408_v53, 8.507059e+37 }
 0x34b   :  { %v1189_v47 = vpop.eup %1188 }
 0x34c   :  { %v400_v48 = vmul.f32 %v1189_v47, %v377_v7  ;;  %vm405_vm12 = vweird.f32 %v1189_v47 }
 0x34d   :  { %vm406_vm14 = vmor %vm404_vm13, %vm405_vm12 }
 0x34e   :  { %v401_v49 = vsub.f32 1.0, %v400_v48 }
 0x350   :  { %v402_v52 = vmul.f32 %v1189_v47, %v401_v49 }
 0x351   :  { %v389_v55 = vpop.xlane.xlu1 %388 }
 0x352   :  { %v403_v56 = vadd.f32 %v1189_v47, %v402_v52  ;;  %1190 = vrcp.f32 %v389_v55  ;;  %v470_v54 = vand.u32 2147483648, %v389_v55  ;;  %v468_v50 = vand.u32 2147483647, %v389_v55 }
 0x353   :  { %vm464_vm3 = vweird.f32 %v389_v55  ;;  %1192 = vrcp.f32 %v1327_v42  ;;  %v930_v42 = vld [vmem:[%s1660_s2 + $0x18] sm:$0xff] }
 0x354   :  { %v407_v58 = vsel %vm406_vm14, %v1189_v47, %v403_v56  ;;  %v471_v9 = vor.u32 1.1754944e-38, %v470_v54  ;;  %vm469_vm5 = vcmp.eq.f32.partialorder %v468_v50, 8.507059e+37 }
 0x355   :  { %v412_v60 = vsel %vm409_vm15, %v411_v57, %v407_v58  ;;  %v1328_v58 = vmov 31.0  }
 0x356   :  { %v413_v61 = vmul.f32 %v1492_v23, %v412_v60  ;;  %1194 = vrcp.f32 %v1328_v58 }
 0x358   :  { %v1191_v63 = vpop.eup %1190  ;;  %519 = vst.msk [vmem:[#allocation8] sm:$0xff] %vm120_vm1, %v413_v61  ;;  %1108 = vmatmul.msk.f32.vlgmr.msra.gmra.mxu3 %vm120_vm1, %v413_v61 }
 0x359   :  { %v460_v0 = vmul.f32 %v1191_v63, %v389_v55  ;;  %vm465_vm2 = vweird.f32 %v1191_v63  ;;  %v1193_v43 = vpop.eup %1192 }
 0x35a   :  { %vm466_vm4 = vmor %vm464_vm3, %vm465_vm2  ;;  %v806_v44 = vmul.f32 32.0, %v1193_v43 }
 0x35b   :  { %v461_v2 = vsub.f32 1.0, %v460_v0 }
 0x35c   :  { %v807_v45 = vsub.f32 1.0, %v806_v44  ;;  %v1195_v60 = vpop.eup %1194 }
 0x35d   :  { %v462_v3 = vmul.f32 %v1191_v63, %v461_v2  ;;  %v825_v61 = vmul.f32 31.0, %v1195_v60  ;;  %vm829_vm8 = vweird.f32 %v1195_v60 }
 0x35e   :  { %v808_v46 = vmul.f32 %v1193_v43, %v807_v45 }
 0x35f   :  { %v463_v6 = vadd.f32 %v1191_v63, %v462_v3 }
 0x360   :  { %v809_v7 = vadd.f32 %v1193_v43, %v808_v46  ;;  %v1154_v46 = vld [vmem:[#allocation5 + $0x4] ss:$0 sm:$0xff] }
 0x361   :  { %v467_v17 = vsel %vm466_vm4, %v1191_v63, %v463_v6  ;;  %v826_v63 = vsub.f32 1.0, %v825_v61  ;;  %v68_v6 = vld [vmem:[%s1659_s1 + $0x50] sm:$0xff] }
 0x362   :  { %v472_v18 = vsel %vm469_vm5, %v471_v9, %v467_v17  ;;  %v67_v9 = vld [vmem:[%s1659_s1 + $0x38] sm:$0xff]  ;;  %914 = vmatpush.msrb.mxu0 %v68_v6  ;;  %v66_v17 = vld [vmem:[%s1659_s1 + $0x20] sm:$0xff]  ;;  %v929_v6 = vld [vmem:[%s1660_s2 + $0x10] sm:$0xff] }
 0x363   :  { %v473_v23 = vmul.f32 %v1496_v8, %v472_v18  ;;  %v72_v8 = vld [vmem:[%s1659_s1 + $0x58] sm:$0xff]  ;;  %v827_v0 = vmul.f32 %v1195_v60, %v826_v63 }
 0x364   :  { %786 = vmatpush.msra.mxu3 %v72_v8  ;;  %915 = vmatpush.msrb.mxu0 %v67_v9  ;;  %v928_v9 = vld [vmem:[%s1660_s2 + $0x8] sm:$0xff] }
 0x365   :  { %523 = vst.msk [vmem:[#allocation8 + $0x20] sm:$0xff] %vm120_vm1, %v473_v23  ;;  %1112 = vmatmul.msk.f32.vlgmr.msrb.gmra.mxu3 %vm120_vm1, %v473_v23  ;;  %v828_v2 = vadd.f32 %v1195_v60, %v827_v0 }
 0x366   :  { %787 = vmatpush.msra.mxu3 %v71_v13  ;;  %916 = vmatpush.msrb.mxu0 %v66_v17  ;;  %v927_v17 = vld [vmem:[%s1660_s2] sm:$0xff] }
 0x367   :  { %v1582_v54 = vsel %vm829_vm8, %v1195_v60, %v828_v2 }
 0x368   :  { %788 = vmatpush.msra.mxu3 %v70_v16 }
 0x36a   :  { %789 = vmatpush.msra.mxu3 %v69_v10 }
 0x39a   :  { %v576_v19 = vpop.f32.mrf.mxu0 }
 0x39b   :  { %736 = vrot.lane.b32.xlu2 %v576_v19, %s1318_s27  ;;  %v65_v19 = vld [vmem:[%s1659_s1 + $0x8] sm:$0xff] }
 0x39c   :  { %917 = vmatpush.msrb.mxu0 %v65_v19 }
 0x3a0   :  { %v628_v20 = vpop.f32.mrf.mxu2 }
 0x3a1   :  { %744 = vrot.lane.b32.xlu0 %v628_v20, %s1325_s16 }
 0x3a2   :  { %v680_v22 = vpop.f32.mrf.mxu0 }
 0x3a7   :  { %v602_v21 = vpop.f32.mrf.mxu1 }
 0x3a8   :  { %740 = vrot.lane.b32.xlu2 %v602_v21, %s1326_s17 }
 0x3ad   :  { %v732_v12 = vpop.f32.mrf.mxu2 }
 0x3af   :  { %v706_v11 = vpop.f32.mrf.mxu1 }
 0x3b0   :  { %757 = vrot.lane.b32.xlu1 %v706_v11, %s1326_s17  ;;  %753 = vrot.lane.b32.xlu2 %v680_v22, %s1318_s27 }
 0x3b8   :  { %761 = vrot.lane.b32.xlu2 %v732_v12, %s1325_s16 }
 0x3db   :  { %v550_v59 = vpop.f32.mrf.mxu3 }
 0x3e8   :  { %v654_v29 = vpop.f32.mrf.mxu3 }
 0x3f5   :  { %v737_v14 = vpop.permute.xlu2 %736 }
 0x3f6   :  { %v747_v24 = vsel %vm120_vm1, %v550_v59, %v737_v14 }
 0x402   :  { %v741_v15 = vpop.permute.xlu2 %740 }
 0x403   :  { %v749_v25 = vsel %vm748_vm6, %v747_v24, %v741_v15 }
 0x40a   :  { %v754_v28 = vpop.permute.xlu2 %753 }
 0x40b   :  { %v764_v30 = vsel %vm120_vm1, %v654_v29, %v754_v28  ;;  %vm810_vm1 = vweird.f32 %v1193_v43 }
 0x40c   :  { %v1568_v47 = vsel %vm810_vm1, %v1193_v43, %v809_v7 }
 0x412   :  { %v762_v32 = vpop.permute.xlu2 %761 }
 0x413   :  { %v745_v26 = vpop.permute.xlu0 %744 }
 0x414   :  { %v751_v27 = vsel %vm750_vm7, %v749_v25, %v745_v26 }
 0x415   :  { %1116 = vmatmul.msk.f32.vlgmr.msra.gmra.mxu3 %vm74_vm0, %v751_v27 }
 0x422   :  { %v758_v31 = vpop.permute.xlu1 %757 }
 0x423   :  { %v765_v33 = vsel %vm748_vm6, %v764_v30, %v758_v31  ;;  %v934_v30 = vld [vmem:[%s1660_s2 + $0x38] sm:$0xff]  ;;  %v933_v31 = vld [vmem:[%s1660_s2 + $0x30] sm:$0xff] }
 0x424   :  { %v766_v34 = vsel %vm750_vm7, %v765_v33, %v762_v32  ;;  %951 = vmatpush.msra.mxu1 %v934_v30  ;;  %vm936_vm7 = vcmask 523264  }
 0x425   :  { %1117 = vmatmul.msk.f32.gmra.mxu3 %vm74_vm0, %v766_v34  ;;  %v932_v34 = vld [vmem:[%s1660_s2 + $0x28] sm:$0xff] }
 0x426   :  { %952 = vmatpush.msra.mxu1 %v933_v31 }
 0x428   :  { %953 = vmatpush.msra.mxu1 %v932_v34 }
 0x498   :  { %v791_v36 = vpop.f32.mrf.mxu3 }
 0x499   :  { %v792_v37 = vadd.f32 %v1153_v35, %v791_v36 }
 0x49b   :  { %v797_v38 = vadd.f32 %v792_v37, %v1382_v4 }
 0x49d   :  { %v799_v39 = vsel %vm74_vm0, %v797_v38, 0.0 }
 0x49e   :  { %800 = vadd.xlane.f32.xlu2 %v799_v39 }
 0x4a8   :  { %v794_v62 = vpop.f32.mrf.mxu3 }
 0x4a9   :  { %v795_v1 = vadd.f32 %v1153_v35, %v794_v62  ;;  %v931_v62 = vld [vmem:[%s1660_s2 + $0x20] sm:$0xff]  ;;  %s1329_s2 = smov [#allocation8]  }
 0x4aa   :  { %954 = vmatpush.msra.mxu1 %v931_v62  ;;  %s1069_s24 = sshll.u32 %s1329_s2, 4  ;;  %s1070_s24 = int_to_ptr.vmem [resolvable:$true] %s1069_s24 }
 0x4ab   :  { %v798_v40 = vadd.f32 %v795_v1, %v1386_v5  ;;  %1077 = dma.vmem_to_hbm [thread:$0]  %s1070_s24, 1024, %s1072_s29, [#allocation9], %s1317_s26, %s1317_s26, %s1318_s27  }
 0x4ac   :  { %955 = vmatpush.msra.mxu1 %v930_v42 }
 0x4ad   :  { %v802_v41 = vsel %vm74_vm0, %v798_v40, 0.0 }
 0x4ae   :  { %803 = vadd.xlane.f32.xlu0 %v802_v41  ;;  %956 = vmatpush.msra.mxu1 %v929_v6  ;;  %v1158_v6 = vld [vmem:[#allocation5 + $0x6] ss:$0 sm:$0xff] }
 0x4b0   :  { %957 = vmatpush.msra.mxu1 %v928_v9 }
 0x4b2   :  { %958 = vmatpush.msra.mxu1 %v927_v17 }
 0x511   :  { %v801_v4 = vpop.xlane.xlu2 %800 }
 0x512   :  { %v812_v48 = vmul.f32 %v1568_v47, %v801_v4 }
 0x514   :  { %v1571_v49 = vsub.f32 %v797_v38, %v812_v48  ;;  %v1155_v48 = vld [vmem:[#allocation5 + $0x5] ss:$0 sm:$0xff] }
 0x516   :  { %v816_v5 = vmul.f32 %v1571_v49, %v1571_v49 }
 0x518   :  { %v818_v51 = vsel %vm74_vm0, %v816_v5, 0.0 }
 0x519   :  { %819 = vadd.xlane.f32.xlu1 %v818_v51 }
 0x521   :  { %v804_v52 = vpop.xlane.xlu0 %803 }
 0x522   :  { %v813_v53 = vmul.f32 %v1568_v47, %v804_v52 }
 0x524   :  { %v1577_v55 = vsub.f32 %v798_v40, %v813_v53 }
 0x526   :  { %v817_v56 = vmul.f32 %v1577_v55, %v1577_v55 }
 0x528   :  { %v821_v57 = vsel %vm74_vm0, %v817_v56, 0.0 }
 0x529   :  { %822 = vadd.xlane.f32.xlu2 %v821_v57 }
 0x58c   :  { %v820_v3 = vpop.xlane.xlu1 %819 }
 0x58d   :  { %v831_v50 = vmul.f32 %v1582_v54, %v820_v3 }
 0x58f   :  { %1196 = vrsqrt.f32 %v831_v50  ;;  %vm840_vm9 = vcmp.eq.f32.partialorder %v831_v50, inf  ;;  %v843_v16 = vand.u32 2147483648, %v831_v50  ;;  %vm842_vm10 = vcmp.eq.f32.partialorder %v831_v50, 0.0 }
 0x595   :  { %v1197_v18 = vpop.eup %1196 }
 0x596   :  { %v834_v23 = vmul.f32 %v1197_v18, %v831_v50 }
 0x598   :  { %v835_v20 = vmul.f32 %v1197_v18, %v834_v23 }
 0x59a   :  { %v836_v21 = vmul.f32 0.5, %v835_v20 }
 0x59c   :  { %v837_v22 = vsub.f32 1.5, %v836_v21  ;;  %v823_v11 = vpop.xlane.xlu2 %822 }
 0x59d   :  { %v832_v12 = vmul.f32 %v1582_v54, %v823_v11  ;;  %v1157_v11 = vld [vmem:[#allocation5 + $0x3] ss:$0 sm:$0xff] }
 0x59e   :  { %v838_v8 = vmul.f32 %v1197_v18, %v837_v22 }
 0x59f   :  { %1198 = vrsqrt.f32 %v832_v12  ;;  %vm852_vm11 = vcmp.eq.f32.partialorder %v832_v12, inf  ;;  %v855_v37 = vand.u32 2147483648, %v832_v12  ;;  %vm854_vm13 = vcmp.eq.f32.partialorder %v832_v12, 0.0 }
 0x5a0   :  { %v839_v13 = vmul.f32 %v838_v8, %v831_v50 }
 0x5a2   :  { %v841_v10 = vsel %vm840_vm9, %v831_v50, %v839_v13 }
 0x5a3   :  { %v844_v14 = vsel %vm842_vm10, %v843_v16, %v841_v10 }
 0x5a4   :  { %v857_v15 = vadd.f32 1e-12, %v844_v14 }
 0x5a5   :  { %v1199_v59 = vpop.eup %1198 }
 0x5a6   :  { %1200 = vrcp.f32 %v857_v15  ;;  %v846_v24 = vmul.f32 %v1199_v59, %v832_v12  ;;  %v870_v36 = vand.u32 2147483648, %v857_v15  ;;  %v868_v39 = vand.u32 2147483647, %v857_v15 }
 0x5a7   :  { %vm864_vm14 = vweird.f32 %v857_v15 }
 0x5a8   :  { %v847_v25 = vmul.f32 %v1199_v59, %v846_v24  ;;  %v871_v43 = vor.u32 1.1754944e-38, %v870_v36  ;;  %vm869_vm2 = vcmp.eq.f32.partialorder %v868_v39, 8.507059e+37 }
 0x5aa   :  { %v848_v26 = vmul.f32 0.5, %v847_v25 }
 0x5ac   :  { %v1201_v27 = vpop.eup %1200  ;;  %v849_v28 = vsub.f32 1.5, %v848_v26 }
 0x5ad   :  { %v860_v29 = vmul.f32 %v1201_v27, %v857_v15  ;;  %vm865_vm12 = vweird.f32 %v1201_v27 }
 0x5ae   :  { %v850_v32 = vmul.f32 %v1199_v59, %v849_v28  ;;  %vm866_vm15 = vmor %vm864_vm14, %vm865_vm12 }
 0x5af   :  { %v861_v33 = vsub.f32 1.0, %v860_v29 }
 0x5b0   :  { %v851_v35 = vmul.f32 %v850_v32, %v832_v12 }
 0x5b1   :  { %v862_v38 = vmul.f32 %v1201_v27, %v861_v33 }
 0x5b2   :  { %v853_v1 = vsel %vm852_vm11, %v832_v12, %v851_v35 }
 0x5b3   :  { %v863_v40 = vadd.f32 %v1201_v27, %v862_v38  ;;  %v856_v41 = vsel %vm854_vm13, %v855_v37, %v853_v1 }
 0x5b4   :  { %v858_v44 = vadd.f32 1e-12, %v856_v41 }
 0x5b5   :  { %v867_v45 = vsel %vm866_vm15, %v1201_v27, %v863_v40 }
 0x5b6   :  { %v872_v7 = vsel %vm869_vm2, %v871_v43, %v867_v45  ;;  %1202 = vrcp.f32 %v858_v44  ;;  %v885_v57 = vand.u32 2147483648, %v858_v44  ;;  %v883_v60 = vand.u32 2147483647, %v858_v44 }
 0x5b7   :  { %v873_v4 = vmul.f32 %v872_v7, %v1571_v49  ;;  %vm879_vm4 = vweird.f32 %v858_v44 }
 0x5b8   :  { %v886_v63 = vor.u32 1.1754944e-38, %v885_v57  ;;  %vm884_vm6 = vcmp.eq.f32.partialorder %v883_v60, 8.507059e+37 }
 0x5b9   :  { %v890_v5 = vmul.f32 %v1154_v46, %v873_v4 }
 0x5bb   :  { %v893_v51 = vadd.f32 %v1155_v48, %v890_v5 }
 0x5bc   :  { %v1203_v52 = vpop.eup %1202 }
 0x5bd   :  { %1118 = vmatmul.msk.f32.vlgmr.msrb.gmra.mxu0 %vm74_vm0, %v893_v51  ;;  %v875_v53 = vmul.f32 %v1203_v52, %v858_v44  ;;  %vm880_vm3 = vweird.f32 %v1203_v52 }
 0x5be   :  { %vm881_vm5 = vmor %vm879_vm4, %vm880_vm3 }
 0x5bf   :  { %v876_v56 = vsub.f32 1.0, %v875_v53 }
 0x5c1   :  { %v877_v58 = vmul.f32 %v1203_v52, %v876_v56 }
 0x5c3   :  { %v878_v61 = vadd.f32 %v1203_v52, %v877_v58 }
 0x5c5   :  { %v882_v0 = vsel %vm881_vm5, %v1203_v52, %v878_v61 }
 0x5c6   :  { %v887_v2 = vsel %vm884_vm6, %v886_v63, %v882_v0 }
 0x5c7   :  { %v888_v49 = vmul.f32 %v887_v2, %v1577_v55  ;;  %v1156_v55 = vld [vmem:[#allocation5 + $0x1] ss:$0 sm:$0xff] }
 0x5c9   :  { %v891_v3 = vmul.f32 %v1154_v46, %v888_v49 }
 0x5cb   :  { %v894_v50 = vadd.f32 %v1155_v48, %v891_v3 }
 0x5cd   :  { %1119 = vmatmul.msk.f32.gmra.mxu0 %vm74_vm0, %v894_v50 }
 0x63a   :  { %v919_v18 = vpop.f32.mrf.mxu0 }
 0x63b   :  { %v920_v23 = vadd.f32 %v1156_v55, %v919_v18 }
 0x63d   :  { %v925_v19 = vmax.f32 %v920_v23, 0.0 }
 0x63f   :  { %1120 = vmatmul.msk.f32.vlgmr.msra.gmra.mxu1 %vm936_vm7, %v925_v19 }
 0x64a   :  { %v922_v20 = vpop.f32.mrf.mxu0 }
 0x64b   :  { %v923_v21 = vadd.f32 %v1156_v55, %v922_v20  ;;  %v1159_v55 = vld [vmem:[#allocation5 + $0x7] ss:$0 sm:$0xff] }
 0x64d   :  { %v926_v22 = vmax.f32 %v923_v21, 0.0 }
 0x64f   :  { %1121 = vmatmul.msk.f32.gmra.mxu1 %vm936_vm7, %v926_v22 }
 0x6bc   :  { %v960_v12 = vpop.f32.mrf.mxu1 }
 0x6bd   :  { %v961_v8 = vadd.f32 %v1157_v11, %v960_v12 }
 0x6bf   :  { %v966_v13 = vadd.f32 %v961_v8, %v893_v51 }
 0x6c1   :  { %v968_v16 = vsel %vm74_vm0, %v966_v13, 0.0 }
 0x6c2   :  { %969 = vadd.xlane.f32.xlu0 %v968_v16 }
 0x6cc   :  { %v963_v10 = vpop.f32.mrf.mxu1 }
 0x6cd   :  { %v964_v14 = vadd.f32 %v1157_v11, %v963_v10 }
 0x6cf   :  { %v967_v15 = vadd.f32 %v964_v14, %v894_v50 }
 0x6d1   :  { %v971_v59 = vsel %vm74_vm0, %v967_v15, 0.0 }
 0x6d2   :  { %972 = vadd.xlane.f32.xlu2 %v971_v59 }
 0x735   :  { %v970_v24 = vpop.xlane.xlu0 %969 }
 0x736   :  { %v974_v25 = vmul.f32 %v970_v24, %v1568_v47 }
 0x738   :  { %v1629_v26 = vsub.f32 %v966_v13, %v974_v25 }
 0x73a   :  { %v978_v27 = vmul.f32 %v1629_v26, %v1629_v26 }
 0x73c   :  { %v980_v28 = vsel %vm74_vm0, %v978_v27, 0.0 }
 0x73d   :  { %981 = vadd.xlane.f32.xlu0 %v980_v28 }
 0x745   :  { %v973_v29 = vpop.xlane.xlu2 %972 }
 0x746   :  { %v975_v30 = vmul.f32 %v973_v29, %v1568_v47 }
 0x748   :  { %v1635_v31 = vsub.f32 %v967_v15, %v975_v30 }
 0x74a   :  { %v979_v32 = vmul.f32 %v1635_v31, %v1635_v31 }
 0x74c   :  { %v983_v33 = vsel %vm74_vm0, %v979_v32, 0.0 }
 0x74d   :  { %984 = vadd.xlane.f32.xlu1 %v983_v33 }
 0x7b0   :  { %v982_v47 = vpop.xlane.xlu0 %981 }
 0x7b1   :  { %v986_v34 = vmul.f32 %v982_v47, %v1582_v54 }
 0x7b3   :  { %1204 = vrsqrt.f32 %v986_v34  ;;  %vm995_vm1 = vcmp.eq.f32.partialorder %v986_v34, inf  ;;  %v998_v42 = vand.u32 2147483648, %v986_v34  ;;  %vm997_vm8 = vcmp.eq.f32.partialorder %v986_v34, 0.0 }
 0x7b9   :  { %v1205_v35 = vpop.eup %1204 }
 0x7ba   :  { %v989_v36 = vmul.f32 %v1205_v35, %v986_v34 }
 0x7bc   :  { %v990_v37 = vmul.f32 %v1205_v35, %v989_v36 }
 0x7be   :  { %v991_v38 = vmul.f32 0.5, %v990_v37 }
 0x7c0   :  { %v992_v39 = vsub.f32 1.5, %v991_v38  ;;  %v985_v62 = vpop.xlane.xlu1 %984 }
 0x7c1   :  { %v987_v1 = vmul.f32 %v985_v62, %v1582_v54 }
 0x7c2   :  { %v993_v40 = vmul.f32 %v1205_v35, %v992_v39 }
 0x7c3   :  { %1206 = vrsqrt.f32 %v987_v1  ;;  %vm1007_vm9 = vcmp.eq.f32.partialorder %v987_v1, inf  ;;  %v1010_v58 = vand.u32 2147483648, %v987_v1  ;;  %vm1009_vm11 = vcmp.eq.f32.partialorder %v987_v1, 0.0 }
 0x7c4   :  { %v994_v41 = vmul.f32 %v993_v40, %v986_v34 }
 0x7c6   :  { %v996_v43 = vsel %vm995_vm1, %v986_v34, %v994_v41 }
 0x7c7   :  { %v999_v44 = vsel %vm997_vm8, %v998_v42, %v996_v43 }
 0x7c8   :  { %v1012_v45 = vadd.f32 1e-12, %v999_v44 }
 0x7c9   :  { %v1207_v46 = vpop.eup %1206 }
 0x7ca   :  { %1208 = vrcp.f32 %v1012_v45  ;;  %v1001_v7 = vmul.f32 %v1207_v46, %v987_v1  ;;  %v1025_v57 = vand.u32 2147483648, %v1012_v45  ;;  %v1023_v61 = vand.u32 2147483647, %v1012_v45 }
 0x7cb   :  { %vm1019_vm12 = vweird.f32 %v1012_v45 }
 0x7cc   :  { %v1002_v4 = vmul.f32 %v1207_v46, %v1001_v7  ;;  %v1026_v3 = vor.u32 1.1754944e-38, %v1025_v57  ;;  %vm1024_vm14 = vcmp.eq.f32.partialorder %v1023_v61, 8.507059e+37 }
 0x7ce   :  { %v1003_v48 = vmul.f32 0.5, %v1002_v4 }
 0x7d0   :  { %v1209_v5 = vpop.eup %1208  ;;  %v1004_v51 = vsub.f32 1.5, %v1003_v48 }
 0x7d1   :  { %v1015_v52 = vmul.f32 %v1209_v5, %v1012_v45  ;;  %vm1020_vm10 = vweird.f32 %v1209_v5 }
 0x7d2   :  { %v1005_v53 = vmul.f32 %v1207_v46, %v1004_v51  ;;  %vm1021_vm13 = vmor %vm1019_vm12, %vm1020_vm10 }
 0x7d3   :  { %v1016_v56 = vsub.f32 1.0, %v1015_v52 }
 0x7d4   :  { %v1006_v54 = vmul.f32 %v1005_v53, %v987_v1 }
 0x7d5   :  { %v1017_v60 = vmul.f32 %v1209_v5, %v1016_v56 }
 0x7d6   :  { %v1008_v63 = vsel %vm1007_vm9, %v987_v1, %v1006_v54 }
 0x7d7   :  { %v1011_v0 = vsel %vm1009_vm11, %v1010_v58, %v1008_v63  ;;  %v1018_v2 = vadd.f32 %v1209_v5, %v1017_v60 }
 0x7d8   :  { %v1013_v49 = vadd.f32 1e-12, %v1011_v0 }
 0x7d9   :  { %v1022_v50 = vsel %vm1021_vm13, %v1209_v5, %v1018_v2 }
 0x7da   :  { %1210 = vrcp.f32 %v1013_v49  ;;  %v1027_v9 = vsel %vm1024_vm14, %v1026_v3, %v1022_v50  ;;  %v1040_v22 = vand.u32 2147483648, %v1013_v49  ;;  %v1038_v12 = vand.u32 2147483647, %v1013_v49 }
 0x7db   :  { %v1028_v17 = vmul.f32 %v1027_v9, %v1629_v26  ;;  %vm1034_vm2 = vweird.f32 %v1013_v49 }
 0x7dc   :  { %v1041_v13 = vor.u32 1.1754944e-38, %v1040_v22  ;;  %vm1039_vm4 = vcmp.eq.f32.partialorder %v1038_v12, 8.507059e+37 }
 0x7dd   :  { %v1045_v18 = vmul.f32 %v1158_v6, %v1028_v17 }
 0x7df   :  { %v1048_v23 = vadd.f32 %v1159_v55, %v1045_v18 }
 0x7e0   :  { %v1211_v19 = vpop.eup %1210 }
 0x7e1   :  { %v1030_v20 = vmul.f32 %v1211_v19, %v1013_v49  ;;  %1050 = vst.msk [vmem:[#allocation7] sm:$0xff] %vm74_vm0, %v1048_v23  ;;  %vm1035_vm15 = vweird.f32 %v1211_v19 }
 0x7e2   :  { %vm1036_vm3 = vmor %vm1034_vm2, %vm1035_vm15 }
 0x7e3   :  { %v1031_v21 = vsub.f32 1.0, %v1030_v20 }
 0x7e5   :  { %v1032_v11 = vmul.f32 %v1211_v19, %v1031_v21 }
 0x7e7   :  { %v1033_v8 = vadd.f32 %v1211_v19, %v1032_v11 }
 0x7e9   :  { %v1037_v16 = vsel %vm1036_vm3, %v1211_v19, %v1033_v8 }
 0x7ea   :  { %v1042_v10 = vsel %vm1039_vm4, %v1041_v13, %v1037_v16 }
 0x7eb   :  { %v1043_v14 = vmul.f32 %v1042_v10, %v1635_v31 }
 0x7ed   :  { %v1046_v15 = vmul.f32 %v1158_v6, %v1043_v14 }
 0x7ef   :  { %v1049_v59 = vadd.f32 %v1159_v55, %v1046_v15 }
 0x7f1   :  { %1051 = vst.msk [vmem:[#allocation7 + $0x8] sm:$0xff] %vm74_vm0, %v1049_v59 }
 0x7f2   :  { %1064 = dma.vmem_to_hbm [thread:$0]  %s1057_s0, 256, %s1059_s6, [#allocation4], %s1317_s26, %s1317_s26, %s1318_s27  }
 0x7f3   :  { %1312 = dma.done.wait [#allocation4], 256  }
 0x7f4   :  { %1313 = vsyncadd [#allocation4], 4294967040 }
 0x7f5   :  { %1314 = dma.done.wait [#allocation9], 1024  }
 0x7f6   :  { %1315 = vsyncadd [#allocation9], 4294966272 }
 0x7f7   :  { %1086 = vsyncpa [#allocation3], 1 }
 0x7f8   :  { %1087 = vsyncpa [#allocation6], 1 }
 0x7f9   :  { %1088 = vsyncpa [#allocation4], 1 }
 0x7fa   :  { %1089 = vsyncpa [#allocation9], 1 }

</bundles_post_ra>
